<compile_context>
chip_gen: v7x
topology: tpu7x:2x2x1
jax: 0.10.0
libtpu: 0.0.40
codegen_flags: <defaults>
</compile_context>

<pallas_src>
import jax
import jax.numpy as jnp
from jax.experimental import pallas as pl
from jax.experimental.pallas import tpu as pltpu

LANE = 128  # pad output dim to the 128-lane width (lane-dense stores)


def _round_up(v, m):
    return ((v + m - 1) // m) * m


def fused_linear_kernel(x_ref, w_ref, b_ref, o_ref):
    # x_ref: [TB, D]  f32 (one batch tile, new block per grid step)
    # w_ref: [D, Op]  bf16 (VMEM-resident across the grid: constant index_map)
    # b_ref: [1, Op]  f32
    # o_ref: [TB, Op] f32
    x = x_ref[...].astype(jnp.bfloat16)          # VPU cast, hidden under DMA
    acc = jnp.dot(x, w_ref[...], preferred_element_type=jnp.float32)
    o_ref[...] = acc + b_ref[...]


def prepare_params(w1, b1, w2, b2):
    """One-time parameter prep (do at model-load time, NOT per forward call).

    Since there is no activation between the two Linears, fold them into a
    single affine map:  y = x @ (w2 @ w1).T + (w2 @ b1 + b2).
    Returns (w_p [D, Op] bf16, b_p [1, Op] f32, num_classes)."""
    O = w2.shape[0]
    Op = _round_up(O, LANE)
    w_folded = (w2.astype(jnp.float32) @ w1.astype(jnp.float32)).T      # [D, O]
    b_folded = w2.astype(jnp.float32) @ b1.astype(jnp.float32) + b2     # [O]
    w_p = jnp.pad(w_folded, ((0, 0), (0, Op - O))).astype(jnp.bfloat16)
    b_p = jnp.pad(b_folded, (0, Op - O)).reshape(1, Op).astype(jnp.float32)
    return w_p, b_p, O


def rucham_psa_jak_sra_forward(x_nchw, w_p, b_p, num_classes, *, block_b=1024):
    """x_nchw: [B, C, H, W] float32 (PyTorch NCHW).
    w_p, b_p: prepared by prepare_params().
    Returns logits [B, num_classes] float32."""
    assert block_b % 8 == 0
    B = x_nchw.shape[0]
    x_flat = x_nchw.reshape(B, -1)          # nn.Flatten(); stays f32, no HBM copy
    D = x_flat.shape[1]
    Op = w_p.shape[1]

    # Batch tiling: either one full-batch block (TB == B is always a legal
    # block shape) or TB rows per step with TB a multiple of 8; the ragged
    # last block is masked by Pallas, so no explicit batch pad is needed.
    if B <= block_b:
        TB = B
    else:
        TB = block_b
        # Keep double-buffered f32 x tiles within a v7x-safe VMEM budget.
        while TB > 8 and 2 * TB * D * 4 > 44 * 1024 * 1024:
            TB //= 2
    nb = pl.cdiv(B, TB)
    # Note: on v7x (2 TCs) prefer nb >= 2 so the "parallel" batch axis feeds
    # both TensorCores; with large B and block_b=1024 that holds naturally.

    vmem_need = (2 * TB * D * 4            # x tiles (f32, double-buffered)
                 + 2 * TB * Op * 4         # output tiles (f32)
                 + 2 * D * Op * 2          # weight (bf16)
                 + 2 * Op * 4)             # bias
    vmem_limit = min(max(int(vmem_need * 5 // 4), 32 * 1024 * 1024),
                     56 * 1024 * 1024)     # stay under v7x's 64 MiB/TC

    cost = pl.CostEstimate(
        flops=2 * B * D * Op,
        transcendentals=0,
        bytes_accessed=(B * D * 4          # x (f32, read once)
                        + D * Op * 2       # folded weight (bf16)
                        + Op * 4           # bias
                        + B * Op * 4),     # output (f32)
    )

    out_padded = pl.pallas_call(
        fused_linear_kernel,
        out_shape=jax.ShapeDtypeStruct((B, Op), jnp.float32),
        grid_spec=pl.GridSpec(
            grid=(nb,),
            in_specs=[
                pl.BlockSpec((TB, D), lambda i: (i, 0)),   # x: new tile per step
                pl.BlockSpec((D, Op), lambda i: (0, 0)),   # weight: resident
                pl.BlockSpec((1, Op), lambda i: (0, 0)),   # bias: resident
            ],
            out_specs=pl.BlockSpec((TB, Op), lambda i: (i, 0)),
        ),
        compiler_params=pltpu.CompilerParams(
            dimension_semantics=("parallel",),
            vmem_limit_bytes=vmem_limit,
        ),
        cost_estimate=cost,
    )(x_flat, w_p, b_p)

    # Only the tiny [B, 128] -> [B, num_classes] lane slice remains outside.
    return out_padded[:, :num_classes]


if __name__ == "__main__":
    # Shapes implied by the module: Resize(32) + ToTensor -> [B, 3, 32, 32],
    # input_shape = 3*32*32 = 3072, hidden_units = 82, output_shape = #classes.
    B, C, Himg, Wimg = 2, 3, 32, 32
    input_shape = C * Himg * Wimg          # 3072
    hidden_units = 82
    output_shape = 10                      # synthetic number of classes

    key = jax.random.PRNGKey(0)
    kx, kw1, kb1, kw2, kb2 = jax.random.split(key, 5)

    x = jax.random.normal(kx, (B, C, Himg, Wimg), dtype=jnp.float32)
    # PyTorch Linear layout: [out_features, in_features].
    w1 = jax.random.normal(kw1, (hidden_units, input_shape), dtype=jnp.float32) * 0.02
    b1 = jax.random.normal(kb1, (hidden_units,), dtype=jnp.float32) * 0.02
    w2 = jax.random.normal(kw2, (output_shape, hidden_units), dtype=jnp.float32) * 0.02
    b2 = jax.random.normal(kb2, (output_shape,), dtype=jnp.float32) * 0.02

    # One-time parameter prep (model-load time), then the hot forward path.
    w_p, b_p, n_classes = prepare_params(w1, b1, w2, b2)
    out = rucham_psa_jak_sra_forward(x, w_p, b_p, n_classes)
    out = jax.block_until_ready(out)
    assert out.shape == (B, output_shape)
    assert out.dtype == jnp.float32

    x_flat = x.reshape(B, -1)

    # Reference 1: same folded/bf16 path in plain JAX (tight check of kernel math).
    w_fold = (w2 @ w1).T                                   # [D, O] f32
    b_fold = w2 @ b1 + b2                                  # [O]
    ref_same = jnp.dot(x_flat.astype(jnp.bfloat16), w_fold.astype(jnp.bfloat16),
                       preferred_element_type=jnp.float32) + b_fold
    assert jnp.allclose(out, ref_same, atol=1e-2, rtol=1e-2)

    # Reference 2: full-precision PyTorch-equivalent math (bf16 rounding of x
    # and of the folded weight gives ~0.5% relative error; fine for inference).
    ref_f32 = (x_flat @ w1.T + b1) @ w2.T + b2
    assert jnp.allclose(out, ref_f32, atol=5e-2, rtol=5e-2)

    print("KERNEL_OK")
</pallas_src>

<mosaic_0001>
module attributes {stable_mosaic.version = 11 : i64} {
  func.func @fused_linear_kernel(%arg0: i32, %arg1: memref<2x3072xf32, #tpu.memory_space<vmem>>, %arg2: memref<3072x128xbf16, #tpu.memory_space<vmem>>, %arg3: memref<1x128xf32, #tpu.memory_space<vmem>>, %arg4: memref<2x128xf32, #tpu.memory_space<vmem>>) attributes {dimension_semantics = [#tpu.dimension_semantics<parallel>], iteration_bounds = array<i64: 1>, scalar_prefetch = 0 : i64, scratch_operands = 0 : i64, tpu.core_type = #tpu.core_type<tc>, window_params = [{transform_indices = @transform_0, window_bounds = array<i64: 2, 3072>}, {pipeline_mode = #tpu.pipeline_mode<synchronous>, transform_indices = @transform_1, window_bounds = array<i64: 3072, 128>}, {pipeline_mode = #tpu.pipeline_mode<synchronous>, transform_indices = @transform_2, window_bounds = array<i64: 1, 128>}, {transform_indices = @transform_3, window_bounds = array<i64: 2, 128>}]} {
    %c0 = arith.constant 0 : index
    %c0_0 = arith.constant 0 : index
    %0 = vector.load %arg1[%c0, %c0_0] : memref<2x3072xf32, #tpu.memory_space<vmem>>, vector<2x3072xf32>
    %1 = arith.truncf %0 : vector<2x3072xf32> to vector<2x3072xbf16>
    %c0_1 = arith.constant 0 : index
    %c0_2 = arith.constant 0 : index
    %2 = vector.load %arg2[%c0_1, %c0_2] : memref<3072x128xbf16, #tpu.memory_space<vmem>>, vector<3072x128xbf16>
    %cst = arith.constant dense<0.000000e+00> : vector<2x128xf32>
    %3 = tpu.matmul %1, %2, %cst {dimension_numbers = #tpu.dot_dimension_numbers<[1], [0], [0], [1], [0, 0, 1, 1], [], []>} : vector<2x3072xbf16>, vector<3072x128xbf16>, vector<2x128xf32> -> vector<2x128xf32>
    %c0_3 = arith.constant 0 : index
    %c0_4 = arith.constant 0 : index
    %4 = vector.load %arg3[%c0_3, %c0_4] : memref<1x128xf32, #tpu.memory_space<vmem>>, vector<1x128xf32>
    %5 = vector.broadcast %4 : vector<1x128xf32> to vector<2x128xf32>
    %6 = arith.addf %3, %5 : vector<2x128xf32>
    %c0_5 = arith.constant 0 : index
    %c0_6 = arith.constant 0 : index
    %7 = vector.load %arg4[%c0_5, %c0_6] : memref<2x128xf32, #tpu.memory_space<vmem>>, vector<2x128xf32>
    tpu.vector_store %arg4[%c0_5, %c0_6], %6 {strides = array<i32>} : memref<2x128xf32, #tpu.memory_space<vmem>>, vector<2x128xf32>,
    return
  }
  func.func @transform_0(%arg0: i32) -> (i32, i32) {
    %c0_i32 = arith.constant 0 : i32
    %c0_i32_0 = arith.constant 0 : i32
    return %arg0, %c0_i32 : i32, i32
  }
  func.func @transform_1(%arg0: i32) -> (i32, i32) {
    %c0_i32 = arith.constant 0 : i32
    %c0_i32_0 = arith.constant 0 : i32
    %c0_i32_1 = arith.constant 0 : i32
    return %c0_i32, %c0_i32_0 : i32, i32
  }
  func.func @transform_2(%arg0: i32) -> (i32, i32) {
    %c0_i32 = arith.constant 0 : i32
    %c0_i32_0 = arith.constant 0 : i32
    %c0_i32_1 = arith.constant 0 : i32
    return %c0_i32, %c0_i32_0 : i32, i32
  }
  func.func @transform_3(%arg0: i32) -> (i32, i32) {
    %c0_i32 = arith.constant 0 : i32
    %c0_i32_0 = arith.constant 0 : i32
    return %arg0, %c0_i32 : i32, i32
  }
}

</mosaic_0001>

<bundles_post_ra>
// kernel: tpu_custom_call.1
= control target key start
LH: loop header
LB: loop body
LE: loop exit
PB: predicated region body
PF: predicated region fallthrough
CT: control target
= control target key end

     0   :  { %8 = vsyncpa [#allocation3], 0  ;;  %s3063_s0 = inlined_call_operand.hbm [shape: f32[2,3072], index: 0, kind: input, shape index: {}]   ;;  %s3064_s1 = inlined_call_operand.hbm [shape: bf16[3072,128], index: 1, kind: input, shape index: {}]   ;;  %s3065_s2 = inlined_call_operand.vmem [shape: f32[1,128], index: 2, kind: input, shape index: {}]   ;;  %s3066_s3 = inlined_call_operand.hbm [shape: f32[2,128], index: 3, kind: output, shape index: {}]  }
   0x1   :  { %9 = vsyncpa [#allocation6], 0 }
   0x2   :  { %10 = vsyncpa [#allocation4], 0  ;;  %s2977_s12 = smov [#allocation2]   ;;  %s2978_s14 = smov [#allocation5]  }
   0x3   :  { %s17_s13 = sshll.u32 %s2977_s12, 4  ;;  %s26_s15 = sshll.u32 %s2978_s14, 4  ;;  %s18_s13 = int_to_ptr.vmem [resolvable:$true] %s17_s13  ;;  %s3003_s15 = int_to_ptr.vmem [resolvable:$true] %s26_s15 }
   0x4   :  { %s2905_s18 = scalar_lea.hbm %s3063_s0, 768 }
   0x5   :  { %p2906_p0 = scmp.ne.s32.totalorder %s3063_s0, %s2905_s18  ;;  %p2909_p1 = scmp.lt.u32.totalorder %s2905_s18, %s3063_s0 }
   0x7   :  { %p2911_p2 = pnand %p2909_p1, %p2906_p0 }
   0x9   :  { %2914 = shalt.err (!%p2911_p2)
}
   0xa   :  { %s2915_s23 = scalar_lea.vmem %s18_s13, 768  ;;  %p2920_p4 = scmp.lt.s32.totalorder %s18_s13, %s18_s13 }
   0xb   :  { %p2916_p3 = scmp.ne.s32.totalorder %s18_s13, %s2915_s23  ;;  %p2921_p5 = scmp.lt.s32.totalorder %s2915_s23, %s2915_s23 }
   0xd   :  { %p2922_p6 = por %p2921_p5, %p2920_p4 }
   0xf   :  { %p2923_p7 = pnand %p2922_p6, %p2916_p3 }
  0x11   :  { %2926 = shalt.err (!%p2923_p7)
}
  0x12   :  { %20 = dma.hbm_to_vmem [thread:$0]  %s3063_s0, 768, %s18_s13, [#allocation3]  }
  0x13   :  { %s2927_s28 = scalar_lea.hbm %s3064_s1, 24576 }
  0x14   :  { %p2928_p8 = scmp.ne.s32.totalorder %s3064_s1, %s2927_s28  ;;  %p2931_p9 = scmp.lt.u32.totalorder %s2927_s28, %s3064_s1 }
  0x16   :  { %p2933_p10 = pnand %p2931_p9, %p2928_p8 }
  0x18   :  { %2936 = shalt.err (!%p2933_p10)
}
  0x19   :  { %s2937_s6 = scalar_lea.vmem %s3003_s15, 24576  ;;  %p2942_p12 = scmp.lt.s32.totalorder %s3003_s15, %s3003_s15 }
  0x1a   :  { %p2938_p11 = scmp.ne.s32.totalorder %s3003_s15, %s2937_s6  ;;  %p2943_p13 = scmp.lt.s32.totalorder %s2937_s6, %s2937_s6 }
  0x1c   :  { %p2944_p0 = por %p2943_p13, %p2942_p12 }
  0x1e   :  { %p2945_p1 = pnand %p2944_p0, %p2938_p11 }
  0x20   :  { %2948 = shalt.err (!%p2945_p1)
}
  0x21   :  { %s2979_s0 = smov 64   ;;  %s2980_s7 = smov 4  }
  0x22   :  { %32 = dma.hbm_to_vmem [thread:$0]  %s3064_s1, 24576, %s3003_s15, [#allocation6], %s2979_s0, %s2979_s0, %s2980_s7  }
  0x23   :  { %2971 = dma.done.wait [#allocation3], 768  }
  0x24   :  { %2972 = vsyncadd [#allocation3], 4294966528 }
  0x25   :  { %2973 = dma.done.wait [#allocation6], 24576  }
  0x26   :  { %2974 = vsyncadd [#allocation6], 4294942720  ;;  %v2707_v0 = vld [vmem:[#allocation5 + $0x40] sm:$0xff]   ;;  %v2711_v4 = vld [vmem:[#allocation5 + $0x48] sm:$0xff]   ;;  %v2981_v22 = vmov 1983009808   ;;  %v58_v24 = vlaneseq }
  0x27   :  { %v2708_v1 = vld [vmem:[#allocation5 + $0xc0] sm:$0xff]   ;;  %2437 = vmatprep.subr.bf16.mxu0 %v2707_v0  ;;  %v2712_v5 = vld [vmem:[#allocation5 + $0xc8] sm:$0xff]   ;;  %v2715_v8 = vld [vmem:[#allocation5 + $0x50] sm:$0xff]   ;;  %v56_v23 = vunpack.c.l.s4 %v2981_v22 }
  0x28   :  { %v2709_v2 = vld [vmem:[#allocation5] sm:$0xff]   ;;  %2459 = vmatprep.subr.bf16.mxu1 %v2708_v1  ;;  %v2713_v6 = vld [vmem:[#allocation5 + $0x8] sm:$0xff]   ;;  %v2716_v9 = vld [vmem:[#allocation5 + $0xd0] sm:$0xff]   ;;  %v59_v30 = vshrl.u32 %v58_v24, 7 }
  0x29   :  { %v2710_v3 = vld [vmem:[#allocation5 + $0x80] sm:$0xff]   ;;  %2438 = vmatpush3.bf16.msra.mxu0 %v2709_v2  ;;  %v2714_v7 = vld [vmem:[#allocation5 + $0x88] sm:$0xff]   ;;  %v2717_v10 = vld [vmem:[#allocation5 + $0x10] sm:$0xff]   ;;  %v57_v29 = vunpack.c.0.s8 %v56_v23 }
  0x2a   :  { %2460 = vmatpush3.bf16.msra.mxu1 %v2710_v3  ;;  %2439 = vmatprep.subr.bf16.mxu0 %v2711_v4  ;;  %v2718_v11 = vld [vmem:[#allocation5 + $0x90] sm:$0xff]   ;;  %v2719_v12 = vld [vmem:[#allocation5 + $0x58] sm:$0xff]   ;;  %v2723_v16 = vld [vmem:[#allocation5 + $0x60] sm:$0xff]  }
  0x2b   :  { %2461 = vmatprep.subr.bf16.mxu1 %v2712_v5  ;;  %v2720_v13 = vld [vmem:[#allocation5 + $0xd8] sm:$0xff]   ;;  %v2724_v17 = vld [vmem:[#allocation5 + $0xe0] sm:$0xff]   ;;  %v2727_v20 = vld [vmem:[#allocation5 + $0x68] sm:$0xff]   ;;  %v3034_v35 = vsub.s32 %v57_v29, %v59_v30 }
  0x2c   :  { %v2721_v14 = vld [vmem:[#allocation5 + $0x18] sm:$0xff]   ;;  %v2725_v18 = vld [vmem:[#allocation5 + $0x20] sm:$0xff]   ;;  %v2728_v21 = vld [vmem:[#allocation5 + $0xe8] sm:$0xff]  }
  0x2d   :  { %2440 = vmatpush3.bf16.msra.mxu0 %v2713_v6  ;;  %v2722_v15 = vld [vmem:[#allocation5 + $0x98] sm:$0xff]   ;;  %v2726_v19 = vld [vmem:[#allocation5 + $0xa0] sm:$0xff]   ;;  %v2729_v25 = vld [vmem:[#allocation5 + $0x28] sm:$0xff]  }
  0x2e   :  { %2462 = vmatpush3.bf16.msra.mxu1 %v2714_v7  ;;  %2441 = vmatprep.subr.bf16.mxu0 %v2715_v8  ;;  %v2730_v26 = vld [vmem:[#allocation5 + $0xa8] sm:$0xff]   ;;  %v2731_v27 = vld [vmem:[#allocation5 + $0x70] sm:$0xff]   ;;  %v2735_v33 = vld [vmem:[#allocation5 + $0x78] sm:$0xff]  }
  0x2f   :  { %2463 = vmatprep.subr.bf16.mxu1 %v2716_v9  ;;  %v2732_v28 = vld [vmem:[#allocation5 + $0xf0] sm:$0xff]   ;;  %v2736_v34 = vld [vmem:[#allocation5 + $0xf8] sm:$0xff]   ;;  %v2740_v41 = vld [vmem:[#allocation5 + $0x140] sm:$0xff]  }
  0x30   :  { %v2733_v31 = vld [vmem:[#allocation5 + $0x30] sm:$0xff]   ;;  %v2737_v36 = vld [vmem:[#allocation5 + $0x38] sm:$0xff]   ;;  %v2741_v42 = vld [vmem:[#allocation5 + $0x1c0] sm:$0xff]  }
  0x31   :  { %2442 = vmatpush3.bf16.msra.mxu0 %v2717_v10  ;;  %v2734_v32 = vld [vmem:[#allocation5 + $0xb0] sm:$0xff]   ;;  %v2738_v37 = vld [vmem:[#allocation5 + $0xb8] sm:$0xff]   ;;  %v2742_v46 = vld [vmem:[#allocation5 + $0x100] sm:$0xff]  }
  0x32   :  { %2464 = vmatpush3.bf16.msra.mxu1 %v2718_v11  ;;  %2443 = vmatprep.subr.bf16.mxu0 %v2719_v12  ;;  %v42_v38 = vld [vmem:[#allocation2] sm:$0xff]  ;;  %v2743_v49 = vld [vmem:[#allocation5 + $0x180] sm:$0xff]   ;;  %v2744_v51 = vld [vmem:[#allocation5 + $0x148] sm:$0xff]  }
  0x33   :  { %2465 = vmatprep.subr.bf16.mxu1 %v2720_v13  ;;  %v61_v39 = vrot.slane %v42_v38, %v3034_v35  ;;  %v54_v40 = vcombine.high %v42_v38, %v42_v38  ;;  %v2745_v53 = vld [vmem:[#allocation5 + $0x1c8] sm:$0xff]   ;;  %v2748_v56 = vld [vmem:[#allocation5 + $0x150] sm:$0xff]   ;;  %v2752_v60 = vld [vmem:[#allocation5 + $0x158] sm:$0xff]  }
  0x34   :  { %v2746_v54 = vld [vmem:[#allocation5 + $0x108] sm:$0xff]   ;;  %v2749_v57 = vld [vmem:[#allocation5 + $0x1d0] sm:$0xff]   ;;  %v2753_v61 = vld [vmem:[#allocation5 + $0x1d8] sm:$0xff]  }
  0x35   :  { %2444 = vmatpush3.bf16.msra.mxu0 %v2721_v14  ;;  %v69_v43 = vcombine.high %v61_v39, %v61_v39  ;;  %v68_v44 = vrot.slane %v54_v40, %v3034_v35  ;;  %v180_v45 = vpack.c.bf16 %v61_v39, %v61_v39  ;;  %v2747_v55 = vld [vmem:[#allocation5 + $0x188] sm:$0xff]   ;;  %v2750_v58 = vld [vmem:[#allocation5 + $0x110] sm:$0xff]   ;;  %v2754_v62 = vld [vmem:[#allocation5 + $0x118] sm:$0xff]  }
  0x36   :  { %2466 = vmatpush3.bf16.msra.mxu1 %v2722_v15  ;;  %2445 = vmatprep.subr.bf16.mxu0 %v2723_v16  ;;  %v2751_v59 = vld [vmem:[#allocation5 + $0x190] sm:$0xff]   ;;  %v2755_v63 = vld [vmem:[#allocation5 + $0x198] sm:$0xff]   ;;  %v2756_v0 = vld [vmem:[#allocation5 + $0x160] sm:$0xff]  }
  0x37   :  { %2467 = vmatprep.subr.bf16.mxu1 %v2724_v17  ;;  %v181_v47 = vpack.c.bf16 %v69_v43, %v69_v43  ;;  %v70_v48 = vcombine.high %v68_v44, %v68_v44  ;;  %v182_v50 = vpack.c.bf16 %v68_v44, %v68_v44  ;;  %v2757_v1 = vld [vmem:[#allocation5 + $0x1e0] sm:$0xff]   ;;  %v2760_v4 = vld [vmem:[#allocation5 + $0x168] sm:$0xff]   ;;  %v2764_v8 = vld [vmem:[#allocation5 + $0x170] sm:$0xff]  }
  0x38   :  { %v2758_v2 = vld [vmem:[#allocation5 + $0x120] sm:$0xff]   ;;  %v2761_v5 = vld [vmem:[#allocation5 + $0x1e8] sm:$0xff]   ;;  %v2765_v9 = vld [vmem:[#allocation5 + $0x1f0] sm:$0xff]  }
  0x39   :  { %2446 = vmatpush3.bf16.msra.mxu0 %v2725_v18  ;;  %1779 = vmatprep.mubr.bf16.mxu0 %v181_v47  ;;  %v183_v52 = vpack.c.bf16 %v70_v48, %v70_v48  ;;  %v2759_v3 = vld [vmem:[#allocation5 + $0x1a0] sm:$0xff]   ;;  %v2762_v6 = vld [vmem:[#allocation5 + $0x128] sm:$0xff]   ;;  %v2766_v10 = vld [vmem:[#allocation5 + $0x130] sm:$0xff]  }
  0x3a   :  { %2468 = vmatpush3.bf16.msra.mxu1 %v2726_v19  ;;  %2447 = vmatprep.subr.bf16.mxu0 %v2727_v20  ;;  %v2763_v7 = vld [vmem:[#allocation5 + $0x1a8] sm:$0xff]   ;;  %v2767_v11 = vld [vmem:[#allocation5 + $0x1b0] sm:$0xff]   ;;  %v2768_v12 = vld [vmem:[#allocation5 + $0x178] sm:$0xff]  }
  0x3b   :  { %2469 = vmatprep.subr.bf16.mxu1 %v2728_v21  ;;  %1819 = vmatprep.mubr.bf16.mxu1 %v183_v52  ;;  %v2769_v13 = vld [vmem:[#allocation5 + $0x1f8] sm:$0xff]   ;;  %v2773_v19 = vld [vmem:[#allocation5 + $0x240] sm:$0xff]   ;;  %v2777_v29 = vld [vmem:[#allocation5 + $0x248] sm:$0xff]  }
  0x3c   :  { %v2770_v14 = vld [vmem:[#allocation5 + $0x138] sm:$0xff]   ;;  %v2774_v22 = vld [vmem:[#allocation5 + $0x2c0] sm:$0xff]   ;;  %v2784_v38 = vld [vmem:[#allocation5 + $0x290] sm:$0xff]  }
  0x3d   :  { %2448 = vmatpush3.bf16.msra.mxu0 %v2729_v25  ;;  %v43_v15 = vld [vmem:[#allocation2 + $0x8] sm:$0xff]  ;;  %v2775_v24 = vld [vmem:[#allocation5 + $0x200] sm:$0xff]   ;;  %v2793_v47 = vld [vmem:[#allocation5 + $0x268] sm:$0xff]  }
  0x3e   :  { %2470 = vmatpush3.bf16.msra.mxu1 %v2730_v26  ;;  %2449 = vmatprep.subr.bf16.mxu0 %v2731_v27  ;;  %v2771_v16 = vld [vmem:[#allocation5 + $0x1b8] sm:$0xff]   ;;  %v78_v17 = vrot.slane %v43_v15, %v3034_v35  ;;  %v71_v18 = vcombine.high %v43_v15, %v43_v15  ;;  %v2776_v27 = vld [vmem:[#allocation5 + $0x280] sm:$0xff]   ;;  %v2794_v48 = vld [vmem:[#allocation5 + $0x2e8] sm:$0xff]  }
  0x3f   :  { %2471 = vmatprep.subr.bf16.mxu1 %v2732_v28  ;;  %v2785_v39 = vld [vmem:[#allocation5 + $0x258] sm:$0xff]   ;;  %v2789_v43 = vld [vmem:[#allocation5 + $0x260] sm:$0xff]   ;;  %v2798_v52 = vld [vmem:[#allocation5 + $0x2f0] sm:$0xff]  }
  0x40   :  { %v86_v20 = vcombine.high %v78_v17, %v78_v17  ;;  %v85_v21 = vrot.slane %v71_v18, %v3034_v35  ;;  %v184_v23 = vpack.c.bf16 %v78_v17, %v78_v17  ;;  %v2786_v40 = vld [vmem:[#allocation5 + $0x2d8] sm:$0xff]   ;;  %v2790_v44 = vld [vmem:[#allocation5 + $0x2e0] sm:$0xff]   ;;  %v2816_v15 = vld [vmem:[#allocation5 + $0x310] sm:$0xff]  }
  0x41   :  { %2450 = vmatpush3.bf16.msra.mxu0 %v2733_v31  ;;  %v2778_v31 = vld [vmem:[#allocation5 + $0x2c8] sm:$0xff]   ;;  %v2818_v17 = vld [vmem:[#allocation5 + $0x358] sm:$0xff]  }
  0x42   :  { %2472 = vmatpush3.bf16.msra.mxu1 %v2734_v32  ;;  %2451 = vmatprep.subr.bf16.mxu0 %v2735_v33  ;;  %v185_v25 = vpack.c.bf16 %v86_v20, %v86_v20  ;;  %v87_v26 = vcombine.high %v85_v21, %v85_v21  ;;  %v186_v28 = vpack.c.bf16 %v85_v21, %v85_v21  ;;  %v2779_v32 = vld [vmem:[#allocation5 + $0x208] sm:$0xff]   ;;  %v2819_v18 = vld [vmem:[#allocation5 + $0x3d8] sm:$0xff]   ;;  %v2822_v21 = vld [vmem:[#allocation5 + $0x360] sm:$0xff]  }
  0x43   :  { %2473 = vmatprep.subr.bf16.mxu1 %v2736_v34  ;;  %v2780_v33 = vld [vmem:[#allocation5 + $0x288] sm:$0xff]   ;;  %v2781_v34 = vld [vmem:[#allocation5 + $0x250] sm:$0xff]   ;;  %v2821_v20 = vld [vmem:[#allocation5 + $0x398] sm:$0xff]  }
  0x44   :  { %v187_v30 = vpack.c.bf16 %v87_v26, %v87_v26  ;;  %v2827_v26 = vld [vmem:[#allocation5 + $0x3e8] sm:$0xff]  }
  0x45   :  { %2452 = vmatpush3.bf16.msra.mxu0 %v2737_v36  ;;  %v2782_v36 = vld [vmem:[#allocation5 + $0x2d0] sm:$0xff]  }
  0x46   :  { %2474 = vmatpush3.bf16.msra.mxu1 %v2738_v37  ;;  %2481 = vmatprep.subr.bf16.mxu0 %v2740_v41  ;;  %v2783_v37 = vld [vmem:[#allocation5 + $0x210] sm:$0xff]   ;;  %v2787_v41 = vld [vmem:[#allocation5 + $0x218] sm:$0xff]  }
  0x47   :  { %2503 = vmatprep.subr.bf16.mxu1 %v2741_v42  ;;  %v2788_v42 = vld [vmem:[#allocation5 + $0x298] sm:$0xff]  }
  0x48   :  { %1780 = vmatmul.mubr.bf16.vlgmr.msra.gmra.mrb[0].mxu0 %v180_v45  ;;  %v2791_v45 = vld [vmem:[#allocation5 + $0x220] sm:$0xff]  }
  0x49   :  { %2482 = vmatpush3.bf16.msra.mxu0 %v2742_v46  ;;  %1820 = vmatmul.mubr.bf16.vlgmr.msra.gmra.mrb[0].mxu1 %v182_v50  ;;  %v2792_v46 = vld [vmem:[#allocation5 + $0x2a0] sm:$0xff]   ;;  %v2796_v50 = vld [vmem:[#allocation5 + $0x2a8] sm:$0xff]  }
  0x4a   :  { %2483 = vmatprep.subr.bf16.mxu0 %v2744_v51  ;;  %2504 = vmatpush3.bf16.msra.mxu1 %v2743_v49  ;;  %v2795_v49 = vld [vmem:[#allocation5 + $0x228] sm:$0xff]   ;;  %v2797_v51 = vld [vmem:[#allocation5 + $0x270] sm:$0xff]  }
  0x4b   :  { %2505 = vmatprep.subr.bf16.mxu1 %v2745_v53  ;;  %1859 = vmatprep.mubr.bf16.mxu0 %v185_v25  ;;  %v2799_v53 = vld [vmem:[#allocation5 + $0x230] sm:$0xff]   ;;  %v2826_v25 = vld [vmem:[#allocation5 + $0x368] sm:$0xff]  }
  0x4c   :  { %1899 = vmatprep.mubr.bf16.mxu1 %v187_v30  ;;  %v2831_v30 = vld [vmem:[#allocation5 + $0x3f0] sm:$0xff]  }
  0x4d   :  { %2484 = vmatpush3.bf16.msra.mxu0 %v2746_v54  ;;  %v2800_v54 = vld [vmem:[#allocation5 + $0x2b0] sm:$0xff]  }
  0x4e   :  { %2485 = vmatprep.subr.bf16.mxu0 %v2748_v56  ;;  %2506 = vmatpush3.bf16.msra.mxu1 %v2747_v55  ;;  %v2801_v55 = vld [vmem:[#allocation5 + $0x278] sm:$0xff]  }
  0x4f   :  { %2507 = vmatprep.subr.bf16.mxu1 %v2749_v57  ;;  %v2802_v56 = vld [vmem:[#allocation5 + $0x2f8] sm:$0xff]  }
  0x50   :  { %v2803_v57 = vld [vmem:[#allocation5 + $0x238] sm:$0xff]  }
  0x51   :  { %2486 = vmatpush3.bf16.msra.mxu0 %v2750_v58  ;;  %v44_v58 = vld [vmem:[#allocation2 + $0x10] sm:$0xff] }
  0x52   :  { %2487 = vmatprep.subr.bf16.mxu0 %v2752_v60  ;;  %2508 = vmatpush3.bf16.msra.mxu1 %v2751_v59  ;;  %v2804_v59 = vld [vmem:[#allocation5 + $0x2b8] sm:$0xff]   ;;  %v95_v60 = vrot.slane %v44_v58, %v3034_v35 }
  0x53   :  { %2509 = vmatprep.subr.bf16.mxu1 %v2753_v61  ;;  %v88_v61 = vcombine.high %v44_v58, %v44_v58  ;;  %v2849_v58 = vld [vmem:[#allocation5 + $0x410] sm:$0xff]  }
  0x55   :  { %2488 = vmatpush3.bf16.msra.mxu0 %v2754_v62  ;;  %v2806_v62 = vld [vmem:[#allocation5 + $0x340] sm:$0xff]  }
  0x56   :  { %2489 = vmatprep.subr.bf16.mxu0 %v2756_v0  ;;  %2510 = vmatpush3.bf16.msra.mxu1 %v2755_v63  ;;  %v103_v63 = vcombine.high %v95_v60, %v95_v60  ;;  %v102_v0 = vrot.slane %v88_v61, %v3034_v35  ;;  %v2852_v61 = vld [vmem:[#allocation5 + $0x4d8] sm:$0xff]  }
  0x57   :  { %2511 = vmatprep.subr.bf16.mxu1 %v2757_v1  ;;  %v2807_v1 = vld [vmem:[#allocation5 + $0x3c0] sm:$0xff]  }
  0x59   :  { %2490 = vmatpush3.bf16.msra.mxu0 %v2758_v2  ;;  %v188_v2 = vpack.c.bf16 %v95_v60, %v95_v60  ;;  %v2850_v60 = vld [vmem:[#allocation5 + $0x490] sm:$0xff]  }
  0x5a   :  { %2491 = vmatprep.subr.bf16.mxu0 %v2760_v4  ;;  %2512 = vmatpush3.bf16.msra.mxu1 %v2759_v3  ;;  %v2808_v3 = vld [vmem:[#allocation5 + $0x300] sm:$0xff]   ;;  %v189_v4 = vpack.c.bf16 %v103_v63, %v103_v63 }
  0x5b   :  { %2513 = vmatprep.subr.bf16.mxu1 %v2761_v5  ;;  %v104_v5 = vcombine.high %v102_v0, %v102_v0  ;;  %v2855_v63 = vld [vmem:[#allocation5 + $0x460] sm:$0xff]  }
  0x5d   :  { %2492 = vmatpush3.bf16.msra.mxu0 %v2762_v6  ;;  %v2809_v6 = vld [vmem:[#allocation5 + $0x380] sm:$0xff]  }
  0x5e   :  { %2493 = vmatprep.subr.bf16.mxu0 %v2764_v8  ;;  %2514 = vmatpush3.bf16.msra.mxu1 %v2763_v7  ;;  %v190_v7 = vpack.c.bf16 %v102_v0, %v102_v0  ;;  %v2810_v8 = vld [vmem:[#allocation5 + $0x348] sm:$0xff]   ;;  %v2854_v0 = vld [vmem:[#allocation5 + $0x498] sm:$0xff]  }
  0x5f   :  { %2515 = vmatprep.subr.bf16.mxu1 %v2765_v9  ;;  %v191_v9 = vpack.c.bf16 %v104_v5, %v104_v5  ;;  %v2860_v5 = vld [vmem:[#allocation5 + $0x4e8] sm:$0xff]  }
  0x61   :  { %2494 = vmatpush3.bf16.msra.mxu0 %v2766_v10  ;;  %v2811_v10 = vld [vmem:[#allocation5 + $0x3c8] sm:$0xff]  }
  0x62   :  { %2495 = vmatprep.subr.bf16.mxu0 %v2768_v12  ;;  %2516 = vmatpush3.bf16.msra.mxu1 %v2767_v11  ;;  %v2812_v11 = vld [vmem:[#allocation5 + $0x308] sm:$0xff]  }
  0x63   :  { %2517 = vmatprep.subr.bf16.mxu1 %v2769_v13  ;;  %v2813_v12 = vld [vmem:[#allocation5 + $0x388] sm:$0xff]   ;;  %v2814_v13 = vld [vmem:[#allocation5 + $0x350] sm:$0xff]  }
  0x65   :  { %2496 = vmatpush3.bf16.msra.mxu0 %v2770_v14  ;;  %v2815_v14 = vld [vmem:[#allocation5 + $0x3d0] sm:$0xff]  }
  0x66   :  { %2525 = vmatprep.subr.bf16.mxu0 %v2773_v19  ;;  %2518 = vmatpush3.bf16.msra.mxu1 %v2771_v16  ;;  %v2817_v16 = vld [vmem:[#allocation5 + $0x390] sm:$0xff]   ;;  %v2820_v19 = vld [vmem:[#allocation5 + $0x318] sm:$0xff]  }
  0x67   :  { %2547 = vmatprep.subr.bf16.mxu1 %v2774_v22  ;;  %v2823_v22 = vld [vmem:[#allocation5 + $0x3e0] sm:$0xff]  }
  0x68   :  { %1860 = vmatmul.mubr.bf16.vlgmr.msra.gmra.mrb[4].mxu0 %v184_v23  ;;  %v2824_v23 = vld [vmem:[#allocation5 + $0x320] sm:$0xff]  }
  0x69   :  { %2526 = vmatpush3.bf16.msra.mxu0 %v2775_v24  ;;  %1900 = vmatmul.mubr.bf16.vlgmr.msra.gmra.mrb[4].mxu1 %v186_v28  ;;  %v2825_v24 = vld [vmem:[#allocation5 + $0x3a0] sm:$0xff]   ;;  %v2829_v28 = vld [vmem:[#allocation5 + $0x3a8] sm:$0xff]  }
  0x6a   :  { %2527 = vmatprep.subr.bf16.mxu0 %v2777_v29  ;;  %2548 = vmatpush3.bf16.msra.mxu1 %v2776_v27  ;;  %v2828_v27 = vld [vmem:[#allocation5 + $0x328] sm:$0xff]   ;;  %v2830_v29 = vld [vmem:[#allocation5 + $0x370] sm:$0xff]  }
  0x6b   :  { %2549 = vmatprep.subr.bf16.mxu1 %v2778_v31  ;;  %1939 = vmatprep.mubr.bf16.mxu0 %v189_v4  ;;  %v2832_v31 = vld [vmem:[#allocation5 + $0x330] sm:$0xff]   ;;  %v2858_v4 = vld [vmem:[#allocation5 + $0x4a0] sm:$0xff]  }
  0x6c   :  { %1979 = vmatprep.mubr.bf16.mxu1 %v191_v9  ;;  %v2864_v9 = vld [vmem:[#allocation5 + $0x4f0] sm:$0xff]  }
  0x6d   :  { %2528 = vmatpush3.bf16.msra.mxu0 %v2779_v32  ;;  %v2833_v32 = vld [vmem:[#allocation5 + $0x3b0] sm:$0xff]  }
  0x6e   :  { %2529 = vmatprep.subr.bf16.mxu0 %v2781_v34  ;;  %2550 = vmatpush3.bf16.msra.mxu1 %v2780_v33  ;;  %v2834_v33 = vld [vmem:[#allocation5 + $0x378] sm:$0xff]  }
  0x6f   :  { %2551 = vmatprep.subr.bf16.mxu1 %v2782_v36  ;;  %v2835_v34 = vld [vmem:[#allocation5 + $0x3f8] sm:$0xff]  }
  0x70   :  { %v2836_v36 = vld [vmem:[#allocation5 + $0x338] sm:$0xff]  }
  0x71   :  { %2530 = vmatpush3.bf16.msra.mxu0 %v2783_v37  ;;  %v45_v37 = vld [vmem:[#allocation2 + $0x18] sm:$0xff] }
  0x72   :  { %2531 = vmatprep.subr.bf16.mxu0 %v2785_v39  ;;  %2552 = vmatpush3.bf16.msra.mxu1 %v2784_v38  ;;  %v112_v38 = vrot.slane %v45_v37, %v3034_v35  ;;  %v105_v39 = vcombine.high %v45_v37, %v45_v37  ;;  %v2882_v37 = vld [vmem:[#allocation5 + $0x510] sm:$0xff]  }
  0x73   :  { %2553 = vmatprep.subr.bf16.mxu1 %v2786_v40  ;;  %v2839_v40 = vld [vmem:[#allocation5 + $0x440] sm:$0xff]  }
  0x75   :  { %2532 = vmatpush3.bf16.msra.mxu0 %v2787_v41  ;;  %v2837_v41 = vld [vmem:[#allocation5 + $0x3b8] sm:$0xff]  }
  0x76   :  { %2533 = vmatprep.subr.bf16.mxu0 %v2789_v43  ;;  %2554 = vmatpush3.bf16.msra.mxu1 %v2788_v42  ;;  %v120_v42 = vcombine.high %v112_v38, %v112_v38  ;;  %v119_v43 = vrot.slane %v105_v39, %v3034_v35  ;;  %v2883_v39 = vld [vmem:[#allocation5 + $0x590] sm:$0xff]  }
  0x77   :  { %2555 = vmatprep.subr.bf16.mxu1 %v2790_v44  ;;  %v2840_v44 = vld [vmem:[#allocation5 + $0x4c0] sm:$0xff]  }
  0x79   :  { %2534 = vmatpush3.bf16.msra.mxu0 %v2791_v45  ;;  %v192_v45 = vpack.c.bf16 %v112_v38, %v112_v38  ;;  %v2884_v38 = vld [vmem:[#allocation5 + $0x558] sm:$0xff]  }
  0x7a   :  { %2535 = vmatprep.subr.bf16.mxu0 %v2793_v47  ;;  %2556 = vmatpush3.bf16.msra.mxu1 %v2792_v46  ;;  %v193_v46 = vpack.c.bf16 %v120_v42, %v120_v42  ;;  %v121_v47 = vcombine.high %v119_v43, %v119_v43  ;;  %v2888_v42 = vld [vmem:[#allocation5 + $0x560] sm:$0xff]  }
  0x7b   :  { %2557 = vmatprep.subr.bf16.mxu1 %v2794_v48  ;;  %v2841_v48 = vld [vmem:[#allocation5 + $0x400] sm:$0xff]  }
  0x7d   :  { %2536 = vmatpush3.bf16.msra.mxu0 %v2795_v49  ;;  %v194_v49 = vpack.c.bf16 %v119_v43, %v119_v43  ;;  %v2887_v43 = vld [vmem:[#allocation5 + $0x598] sm:$0xff]  }
  0x7e   :  { %2537 = vmatprep.subr.bf16.mxu0 %v2797_v51  ;;  %2558 = vmatpush3.bf16.msra.mxu1 %v2796_v50  ;;  %v2843_v50 = vld [vmem:[#allocation5 + $0x448] sm:$0xff]   ;;  %v195_v51 = vpack.c.bf16 %v121_v47, %v121_v47  ;;  %v2891_v47 = vld [vmem:[#allocation5 + $0x5a0] sm:$0xff]  }
  0x7f   :  { %2559 = vmatprep.subr.bf16.mxu1 %v2798_v52  ;;  %v2842_v52 = vld [vmem:[#allocation5 + $0x480] sm:$0xff]  }
  0x81   :  { %2538 = vmatpush3.bf16.msra.mxu0 %v2799_v53  ;;  %v2844_v53 = vld [vmem:[#allocation5 + $0x4c8] sm:$0xff]  }
  0x82   :  { %2539 = vmatprep.subr.bf16.mxu0 %v2801_v55  ;;  %2560 = vmatpush3.bf16.msra.mxu1 %v2800_v54  ;;  %v2845_v54 = vld [vmem:[#allocation5 + $0x408] sm:$0xff]   ;;  %v2847_v55 = vld [vmem:[#allocation5 + $0x450] sm:$0xff]  }
  0x83   :  { %2561 = vmatprep.subr.bf16.mxu1 %v2802_v56  ;;  %v2846_v56 = vld [vmem:[#allocation5 + $0x488] sm:$0xff]  }
  0x85   :  { %2540 = vmatpush3.bf16.msra.mxu0 %v2803_v57  ;;  %v2848_v57 = vld [vmem:[#allocation5 + $0x4d0] sm:$0xff]  }
  0x86   :  { %2569 = vmatprep.subr.bf16.mxu0 %v2806_v62  ;;  %2562 = vmatpush3.bf16.msra.mxu1 %v2804_v59  ;;  %v2851_v59 = vld [vmem:[#allocation5 + $0x458] sm:$0xff]  }
  0x87   :  { %2591 = vmatprep.subr.bf16.mxu1 %v2807_v1  ;;  %v2853_v62 = vld [vmem:[#allocation5 + $0x418] sm:$0xff]   ;;  %v2856_v1 = vld [vmem:[#allocation5 + $0x4e0] sm:$0xff]  }
  0x88   :  { %1940 = vmatmul.mubr.bf16.vlgmr.msra.gmra.mrb[8].mxu0 %v188_v2  ;;  %v2857_v2 = vld [vmem:[#allocation5 + $0x420] sm:$0xff]  }
  0x89   :  { %2570 = vmatpush3.bf16.msra.mxu0 %v2808_v3  ;;  %1980 = vmatmul.mubr.bf16.vlgmr.msra.gmra.mrb[8].mxu1 %v190_v7  ;;  %v2859_v3 = vld [vmem:[#allocation5 + $0x468] sm:$0xff]   ;;  %v2863_v7 = vld [vmem:[#allocation5 + $0x470] sm:$0xff]  }
  0x8a   :  { %2571 = vmatprep.subr.bf16.mxu0 %v2810_v8  ;;  %2592 = vmatpush3.bf16.msra.mxu1 %v2809_v6  ;;  %v2861_v6 = vld [vmem:[#allocation5 + $0x428] sm:$0xff]  }
  0x8b   :  { %2593 = vmatprep.subr.bf16.mxu1 %v2811_v10  ;;  %2019 = vmatprep.mubr.bf16.mxu0 %v193_v46  ;;  %v2862_v8 = vld [vmem:[#allocation5 + $0x4a8] sm:$0xff]   ;;  %v2865_v10 = vld [vmem:[#allocation5 + $0x430] sm:$0xff]  }
  0x8c   :  { %2059 = vmatprep.mubr.bf16.mxu1 %v195_v51  ;;  %v2892_v46 = vld [vmem:[#allocation5 + $0x568] sm:$0xff]  }
  0x8d   :  { %2572 = vmatpush3.bf16.msra.mxu0 %v2812_v11  ;;  %v2867_v11 = vld [vmem:[#allocation5 + $0x478] sm:$0xff]   ;;  %v2895_v51 = vld [vmem:[#allocation5 + $0x5a8] sm:$0xff]  }
  0x8e   :  { %2573 = vmatprep.subr.bf16.mxu0 %v2814_v13  ;;  %2594 = vmatpush3.bf16.msra.mxu1 %v2813_v12  ;;  %v2866_v12 = vld [vmem:[#allocation5 + $0x4b0] sm:$0xff]   ;;  %v2868_v13 = vld [vmem:[#allocation5 + $0x4f8] sm:$0xff]  }
  0x8f   :  { %2595 = vmatprep.subr.bf16.mxu1 %v2815_v14  ;;  %v46_v14 = vld [vmem:[#allocation2 + $0x20] sm:$0xff] }
  0x91   :  { %2574 = vmatpush3.bf16.msra.mxu0 %v2816_v15  ;;  %v2869_v15 = vld [vmem:[#allocation5 + $0x438] sm:$0xff]  }
  0x92   :  { %2575 = vmatprep.subr.bf16.mxu0 %v2818_v17  ;;  %2596 = vmatpush3.bf16.msra.mxu1 %v2817_v16  ;;  %v129_v16 = vrot.slane %v46_v14, %v3034_v35  ;;  %v122_v17 = vcombine.high %v46_v14, %v46_v14 }
  0x93   :  { %2597 = vmatprep.subr.bf16.mxu1 %v2819_v18  ;;  %v2872_v18 = vld [vmem:[#allocation5 + $0x540] sm:$0xff]  }
  0x95   :  { %2576 = vmatpush3.bf16.msra.mxu0 %v2820_v19  ;;  %v2870_v19 = vld [vmem:[#allocation5 + $0x4b8] sm:$0xff]  }
  0x96   :  { %2577 = vmatprep.subr.bf16.mxu0 %v2822_v21  ;;  %2598 = vmatpush3.bf16.msra.mxu1 %v2821_v20  ;;  %v137_v20 = vcombine.high %v129_v16, %v129_v16  ;;  %v136_v21 = vrot.slane %v122_v17, %v3034_v35 }
  0x97   :  { %2599 = vmatprep.subr.bf16.mxu1 %v2823_v22  ;;  %v196_v22 = vpack.c.bf16 %v129_v16, %v129_v16 }
  0x99   :  { %2578 = vmatpush3.bf16.msra.mxu0 %v2824_v23  ;;  %v2873_v23 = vld [vmem:[#allocation5 + $0x5c0] sm:$0xff]  }
  0x9a   :  { %2579 = vmatprep.subr.bf16.mxu0 %v2826_v25  ;;  %2600 = vmatpush3.bf16.msra.mxu1 %v2825_v24  ;;  %v197_v24 = vpack.c.bf16 %v137_v20, %v137_v20  ;;  %v138_v25 = vcombine.high %v136_v21, %v136_v21 }
  0x9b   :  { %2601 = vmatprep.subr.bf16.mxu1 %v2827_v26  ;;  %v2874_v26 = vld [vmem:[#allocation5 + $0x500] sm:$0xff]  }
  0x9d   :  { %2580 = vmatpush3.bf16.msra.mxu0 %v2828_v27  ;;  %v198_v27 = vpack.c.bf16 %v136_v21, %v136_v21 }
  0x9e   :  { %2581 = vmatprep.subr.bf16.mxu0 %v2830_v29  ;;  %2602 = vmatpush3.bf16.msra.mxu1 %v2829_v28  ;;  %v2876_v28 = vld [vmem:[#allocation5 + $0x548] sm:$0xff]   ;;  %v199_v29 = vpack.c.bf16 %v138_v25, %v138_v25 }
  0x9f   :  { %2603 = vmatprep.subr.bf16.mxu1 %v2831_v30  ;;  %v2875_v30 = vld [vmem:[#allocation5 + $0x580] sm:$0xff]  }
  0xa1   :  { %2582 = vmatpush3.bf16.msra.mxu0 %v2832_v31  ;;  %v2877_v31 = vld [vmem:[#allocation5 + $0x5c8] sm:$0xff]  }
  0xa2   :  { %2583 = vmatprep.subr.bf16.mxu0 %v2834_v33  ;;  %2604 = vmatpush3.bf16.msra.mxu1 %v2833_v32  ;;  %v2878_v32 = vld [vmem:[#allocation5 + $0x508] sm:$0xff]   ;;  %v2880_v33 = vld [vmem:[#allocation5 + $0x550] sm:$0xff]  }
  0xa3   :  { %2605 = vmatprep.subr.bf16.mxu1 %v2835_v34  ;;  %v2879_v34 = vld [vmem:[#allocation5 + $0x588] sm:$0xff]  }
  0xa5   :  { %2584 = vmatpush3.bf16.msra.mxu0 %v2836_v36  ;;  %v2881_v36 = vld [vmem:[#allocation5 + $0x5d0] sm:$0xff]  }
  0xa6   :  { %2613 = vmatprep.subr.bf16.mxu0 %v2839_v40  ;;  %2606 = vmatpush3.bf16.msra.mxu1 %v2837_v41  ;;  %v2885_v40 = vld [vmem:[#allocation5 + $0x5d8] sm:$0xff]  }
  0xa7   :  { %2635 = vmatprep.subr.bf16.mxu1 %v2840_v44  ;;  %v2886_v41 = vld [vmem:[#allocation5 + $0x518] sm:$0xff]   ;;  %v2889_v44 = vld [vmem:[#allocation5 + $0x5e0] sm:$0xff]  }
  0xa8   :  { %2020 = vmatmul.mubr.bf16.vlgmr.msra.gmra.mrb[12].mxu0 %v192_v45  ;;  %v2890_v45 = vld [vmem:[#allocation5 + $0x520] sm:$0xff]  }
  0xa9   :  { %2614 = vmatpush3.bf16.msra.mxu0 %v2841_v48  ;;  %2060 = vmatmul.mubr.bf16.vlgmr.msra.gmra.mrb[12].mxu1 %v194_v49  ;;  %v2893_v48 = vld [vmem:[#allocation5 + $0x5e8] sm:$0xff]  }
  0xaa   :  { %2615 = vmatprep.subr.bf16.mxu0 %v2843_v50  ;;  %2636 = vmatpush3.bf16.msra.mxu1 %v2842_v52  ;;  %v2894_v49 = vld [vmem:[#allocation5 + $0x528] sm:$0xff]   ;;  %v2896_v50 = vld [vmem:[#allocation5 + $0x570] sm:$0xff]  }
  0xab   :  { %2637 = vmatprep.subr.bf16.mxu1 %v2844_v53  ;;  %2099 = vmatprep.mubr.bf16.mxu0 %v197_v24  ;;  %v2897_v52 = vld [vmem:[#allocation5 + $0x5f0] sm:$0xff]  }
  0xac   :  { %2139 = vmatprep.mubr.bf16.mxu1 %v199_v29  ;;  %v2898_v53 = vld [vmem:[#allocation5 + $0x530] sm:$0xff]  }
  0xad   :  { %2616 = vmatpush3.bf16.msra.mxu0 %v2845_v54  ;;  %v2900_v54 = vld [vmem:[#allocation5 + $0x578] sm:$0xff]  }
  0xae   :  { %2617 = vmatprep.subr.bf16.mxu0 %v2847_v55  ;;  %2638 = vmatpush3.bf16.msra.mxu1 %v2846_v56  ;;  %v2899_v55 = vld [vmem:[#allocation5 + $0x5b0] sm:$0xff]   ;;  %v2901_v56 = vld [vmem:[#allocation5 + $0x5f8] sm:$0xff]  }
  0xaf   :  { %2639 = vmatprep.subr.bf16.mxu1 %v2848_v57  ;;  %v47_v57 = vld [vmem:[#allocation2 + $0x28] sm:$0xff] }
  0xb1   :  { %2618 = vmatpush3.bf16.msra.mxu0 %v2849_v58  ;;  %v2902_v58 = vld [vmem:[#allocation5 + $0x538] sm:$0xff]  }
  0xb2   :  { %2619 = vmatprep.subr.bf16.mxu0 %v2851_v59  ;;  %2640 = vmatpush3.bf16.msra.mxu1 %v2850_v60  ;;  %v146_v59 = vrot.slane %v47_v57, %v3034_v35  ;;  %v139_v60 = vcombine.high %v47_v57, %v47_v57 }
  0xb3   :  { %2641 = vmatprep.subr.bf16.mxu1 %v2852_v61  ;;  %v2903_v61 = vld [vmem:[#allocation5 + $0x5b8] sm:$0xff]  }
  0xb5   :  { %2620 = vmatpush3.bf16.msra.mxu0 %v2853_v62  ;;  %v154_v62 = vcombine.high %v146_v59, %v146_v59 }
  0xb6   :  { %2621 = vmatprep.subr.bf16.mxu0 %v2855_v63  ;;  %2642 = vmatpush3.bf16.msra.mxu1 %v2854_v0  ;;  %v153_v63 = vrot.slane %v139_v60, %v3034_v35  ;;  %v200_v0 = vpack.c.bf16 %v146_v59, %v146_v59 }
  0xb7   :  { %2643 = vmatprep.subr.bf16.mxu1 %v2856_v1  ;;  %v201_v1 = vpack.c.bf16 %v154_v62, %v154_v62 }
  0xb9   :  { %2622 = vmatpush3.bf16.msra.mxu0 %v2857_v2  ;;  %v155_v2 = vcombine.high %v153_v63, %v153_v63 }
  0xba   :  { %2623 = vmatprep.subr.bf16.mxu0 %v2859_v3  ;;  %2644 = vmatpush3.bf16.msra.mxu1 %v2858_v4  ;;  %v202_v3 = vpack.c.bf16 %v153_v63, %v153_v63 }
  0xbb   :  { %2645 = vmatprep.subr.bf16.mxu1 %v2860_v5  ;;  %v203_v4 = vpack.c.bf16 %v155_v2, %v155_v2 }
  0xbd   :  { %2624 = vmatpush3.bf16.msra.mxu0 %v2861_v6  ;;  %v2244_v6 = vld [vmem:[%s3065_s2] ss:$0 sm:$0xff]  ;;  %s2982_s2 = smov [#allocation7]  }
  0xbe   :  { %2625 = vmatprep.subr.bf16.mxu0 %v2863_v7  ;;  %2646 = vmatpush3.bf16.msra.mxu1 %v2862_v8  ;;  %s2234_s11 = sshll.u32 %s2982_s2, 4  ;;  %s2235_s11 = int_to_ptr.vmem [resolvable:$true] %s2234_s11 }
  0xbf   :  { %2647 = vmatprep.subr.bf16.mxu1 %v2864_v9  ;;  %s2949_s12 = scalar_lea.vmem %s2235_s11, 32  ;;  %p2954_p3 = scmp.lt.s32.totalorder %s2235_s11, %s2235_s11 }
  0xc0   :  { %p2950_p2 = scmp.ne.s32.totalorder %s2235_s11, %s2949_s12  ;;  %p2955_p4 = scmp.lt.s32.totalorder %s2949_s12, %s2949_s12 }
  0xc1   :  { %2626 = vmatpush3.bf16.msra.mxu0 %v2865_v10 }
  0xc2   :  { %2627 = vmatprep.subr.bf16.mxu0 %v2867_v11  ;;  %2648 = vmatpush3.bf16.msra.mxu1 %v2866_v12  ;;  %p2956_p5 = por %p2955_p4, %p2954_p3 }
  0xc3   :  { %2649 = vmatprep.subr.bf16.mxu1 %v2868_v13 }
  0xc4   :  { %p2957_p6 = pnand %p2956_p5, %p2950_p2 }
  0xc5   :  { %2628 = vmatpush3.bf16.msra.mxu0 %v2869_v15 }
  0xc6   :  { %2657 = vmatprep.subr.bf16.mxu0 %v2872_v18  ;;  %2650 = vmatpush3.bf16.msra.mxu1 %v2870_v19 }
  0xc7   :  { %2679 = vmatprep.subr.bf16.mxu1 %v2873_v23 }
  0xc8   :  { %2100 = vmatmul.mubr.bf16.vlgmr.msra.gmra.mrb[16].mxu0 %v196_v22 }
  0xc9   :  { %2658 = vmatpush3.bf16.msra.mxu0 %v2874_v26  ;;  %2140 = vmatmul.mubr.bf16.vlgmr.msra.gmra.mrb[16].mxu1 %v198_v27 }
  0xca   :  { %2659 = vmatprep.subr.bf16.mxu0 %v2876_v28  ;;  %2680 = vmatpush3.bf16.msra.mxu1 %v2875_v30 }
  0xcb   :  { %2681 = vmatprep.subr.bf16.mxu1 %v2877_v31  ;;  %2179 = vmatprep.mubr.bf16.mxu0 %v201_v1 }
  0xcc   :  { %2219 = vmatprep.mubr.bf16.mxu1 %v203_v4 }
  0xcd   :  { %2660 = vmatpush3.bf16.msra.mxu0 %v2878_v32 }
  0xce   :  { %2661 = vmatprep.subr.bf16.mxu0 %v2880_v33  ;;  %2682 = vmatpush3.bf16.msra.mxu1 %v2879_v34 }
  0xcf   :  { %2683 = vmatprep.subr.bf16.mxu1 %v2881_v36 }
  0xd1   :  { %2662 = vmatpush3.bf16.msra.mxu0 %v2882_v37 }
  0xd2   :  { %2663 = vmatprep.subr.bf16.mxu0 %v2884_v38  ;;  %2684 = vmatpush3.bf16.msra.mxu1 %v2883_v39 }
  0xd3   :  { %2685 = vmatprep.subr.bf16.mxu1 %v2885_v40 }
  0xd5   :  { %2664 = vmatpush3.bf16.msra.mxu0 %v2886_v41 }
  0xd6   :  { %2665 = vmatprep.subr.bf16.mxu0 %v2888_v42  ;;  %2686 = vmatpush3.bf16.msra.mxu1 %v2887_v43 }
  0xd7   :  { %2687 = vmatprep.subr.bf16.mxu1 %v2889_v44 }
  0xd9   :  { %2666 = vmatpush3.bf16.msra.mxu0 %v2890_v45 }
  0xda   :  { %2667 = vmatprep.subr.bf16.mxu0 %v2892_v46  ;;  %2688 = vmatpush3.bf16.msra.mxu1 %v2891_v47 }
  0xdb   :  { %2689 = vmatprep.subr.bf16.mxu1 %v2893_v48 }
  0xdd   :  { %2668 = vmatpush3.bf16.msra.mxu0 %v2894_v49 }
  0xde   :  { %2669 = vmatprep.subr.bf16.mxu0 %v2896_v50  ;;  %2690 = vmatpush3.bf16.msra.mxu1 %v2895_v51 }
  0xdf   :  { %2691 = vmatprep.subr.bf16.mxu1 %v2897_v52 }
  0xe1   :  { %2670 = vmatpush3.bf16.msra.mxu0 %v2898_v53 }
  0xe2   :  { %2671 = vmatprep.subr.bf16.mxu0 %v2900_v54  ;;  %2692 = vmatpush3.bf16.msra.mxu1 %v2899_v55 }
  0xe3   :  { %2693 = vmatprep.subr.bf16.mxu1 %v2901_v56 }
  0xe5   :  { %2672 = vmatpush3.bf16.msra.mxu0 %v2902_v58 }
  0xe6   :  { %2694 = vmatpush3.bf16.msra.mxu1 %v2903_v61 }
  0xe8   :  { %2180 = vmatmul.mubr.bf16.vlgmr.msra.gmra.mrb[20].mxu0 %v200_v0 }
  0xe9   :  { %2220 = vmatmul.mubr.bf16.vlgmr.msra.gmra.mrb[20].mxu1 %v202_v3 }
 0x11b   :  { %v2453_v5 = vpop.f32.mrb[0].mxu0 }
 0x11c   :  { %v2454_v7 = vpop.f32.mrb[1].mxu0  ;;  %v2475_v8 = vpop.f32.mrb[0].mxu1 }
 0x11d   :  { %v2455_v35 = vadd.f32 %v2454_v7, %v2453_v5  ;;  %v2456_v9 = vpop.f32.mrb[2].mxu0  ;;  %v2476_v10 = vpop.f32.mrb[1].mxu1 }
 0x11e   :  { %v2457_v11 = vpop.f32.mrb[3].mxu0  ;;  %v2477_v13 = vadd.f32 %v2476_v10, %v2475_v8  ;;  %v2478_v14 = vpop.f32.mrb[2].mxu1 }
 0x11f   :  { %v1782_v12 = vadd.f32 %v2455_v35, %v2244_v6  ;;  %v2479_v15 = vpop.f32.mrb[3].mxu1 }
 0x121   :  { %v1822_v16 = vadd.f32 %v2477_v13, %v1782_v12 }
 0x13b   :  { %v2497_v17 = vpop.f32.mrb[4].mxu0 }
 0x13c   :  { %v2498_v18 = vpop.f32.mrb[5].mxu0  ;;  %v2519_v19 = vpop.f32.mrb[4].mxu1 }
 0x13d   :  { %v2499_v20 = vadd.f32 %v2498_v18, %v2497_v17  ;;  %v2500_v21 = vpop.f32.mrb[6].mxu0  ;;  %v2520_v22 = vpop.f32.mrb[5].mxu1 }
 0x13e   :  { %v2501_v23 = vpop.f32.mrb[7].mxu0  ;;  %v2521_v25 = vadd.f32 %v2520_v22, %v2519_v19  ;;  %v2522_v26 = vpop.f32.mrb[6].mxu1 }
 0x13f   :  { %v1862_v24 = vadd.f32 %v2499_v20, %v1822_v16  ;;  %v2523_v27 = vpop.f32.mrb[7].mxu1 }
 0x141   :  { %v1902_v28 = vadd.f32 %v2521_v25, %v1862_v24 }
 0x15b   :  { %v2541_v29 = vpop.f32.mrb[8].mxu0 }
 0x15c   :  { %v2542_v30 = vpop.f32.mrb[9].mxu0  ;;  %v2563_v31 = vpop.f32.mrb[8].mxu1 }
 0x15d   :  { %v2543_v32 = vadd.f32 %v2542_v30, %v2541_v29  ;;  %v2544_v33 = vpop.f32.mrb[10].mxu0  ;;  %v2564_v34 = vpop.f32.mrb[9].mxu1 }
 0x15e   :  { %v2545_v36 = vpop.f32.mrb[11].mxu0  ;;  %v2565_v38 = vadd.f32 %v2564_v34, %v2563_v31  ;;  %v2566_v39 = vpop.f32.mrb[10].mxu1 }
 0x15f   :  { %v1942_v37 = vadd.f32 %v2543_v32, %v1902_v28  ;;  %v2567_v40 = vpop.f32.mrb[11].mxu1 }
 0x161   :  { %v1982_v41 = vadd.f32 %v2565_v38, %v1942_v37 }
 0x17b   :  { %v2585_v42 = vpop.f32.mrb[12].mxu0 }
 0x17c   :  { %v2586_v43 = vpop.f32.mrb[13].mxu0  ;;  %v2607_v44 = vpop.f32.mrb[12].mxu1 }
 0x17d   :  { %v2587_v45 = vadd.f32 %v2586_v43, %v2585_v42  ;;  %v2588_v46 = vpop.f32.mrb[14].mxu0  ;;  %v2608_v47 = vpop.f32.mrb[13].mxu1 }
 0x17e   :  { %v2589_v48 = vpop.f32.mrb[15].mxu0  ;;  %v2609_v50 = vadd.f32 %v2608_v47, %v2607_v44  ;;  %v2610_v51 = vpop.f32.mrb[14].mxu1 }
 0x17f   :  { %v2022_v49 = vadd.f32 %v2587_v45, %v1982_v41  ;;  %v2611_v52 = vpop.f32.mrb[15].mxu1 }
 0x181   :  { %v2062_v53 = vadd.f32 %v2609_v50, %v2022_v49 }
 0x19b   :  { %v2629_v54 = vpop.f32.mrb[16].mxu0 }
 0x19c   :  { %v2630_v55 = vpop.f32.mrb[17].mxu0  ;;  %v2651_v56 = vpop.f32.mrb[16].mxu1 }
 0x19d   :  { %v2631_v57 = vadd.f32 %v2630_v55, %v2629_v54  ;;  %v2632_v58 = vpop.f32.mrb[18].mxu0  ;;  %v2652_v59 = vpop.f32.mrb[17].mxu1 }
 0x19e   :  { %v2633_v60 = vpop.f32.mrb[19].mxu0  ;;  %v2653_v62 = vadd.f32 %v2652_v59, %v2651_v56  ;;  %v2654_v63 = vpop.f32.mrb[18].mxu1 }
 0x19f   :  { %v2102_v61 = vadd.f32 %v2631_v57, %v2062_v53  ;;  %v2655_v0 = vpop.f32.mrb[19].mxu1 }
 0x1a1   :  { %v2142_v1 = vadd.f32 %v2653_v62, %v2102_v61 }
 0x1bb   :  { %v2673_v2 = vpop.f32.mrb[20].mxu0 }
 0x1bc   :  { %v2674_v3 = vpop.f32.mrb[21].mxu0  ;;  %v2695_v4 = vpop.f32.mrb[20].mxu1 }
 0x1bd   :  { %v2675_v5 = vadd.f32 %v2674_v3, %v2673_v2  ;;  %v2676_v6 = vpop.f32.mrb[22].mxu0  ;;  %v2696_v7 = vpop.f32.mrb[21].mxu1 }
 0x1be   :  { %v2677_v8 = vpop.f32.mrb[23].mxu0  ;;  %v2697_v9 = vadd.f32 %v2696_v7, %v2695_v4  ;;  %v2698_v10 = vpop.f32.mrb[22].mxu1 }
 0x1bf   :  { %v2182_v35 = vadd.f32 %v2675_v5, %v2142_v1  ;;  %v2699_v11 = vpop.f32.mrb[23].mxu1 }
 0x1c1   :  { %v2222_v12 = vadd.f32 %v2697_v9, %v2182_v35 }
 0x1c3   :  { %2227 = vst [vmem:[#allocation7] sm:$0x3] %v2222_v12 }
 0x1c4   :  { %2960 = shalt.err (!%p2957_p6)
}
 0x1c5   :  { %s2961_s15 = scalar_lea.hbm %s3066_s3, 32 }
 0x1c6   :  { %p2962_p7 = scmp.ne.s32.totalorder %s3066_s3, %s2961_s15  ;;  %p2965_p8 = scmp.lt.u32.totalorder %s2961_s15, %s3066_s3 }
 0x1c8   :  { %p2967_p9 = pnand %p2965_p8, %p2962_p7 }
 0x1ca   :  { %2970 = shalt.err (!%p2967_p9)
}
 0x1cb   :  { %2237 = dma.vmem_to_hbm [thread:$0]  %s2235_s11, 32, %s3066_s3, [#allocation4]  }
 0x1cc   :  { %2975 = dma.done.wait [#allocation4], 32  }
 0x1cd   :  { %2976 = vsyncadd [#allocation4], 4294967264 }
 0x1ce   :  { %2241 = vsyncpa [#allocation3], 1 }
 0x1cf   :  { %2242 = vsyncpa [#allocation6], 1 }
 0x1d0   :  { %2243 = vsyncpa [#allocation4], 1 }

</bundles_post_ra>
